<compile_context>
chip_gen: v5e
topology: v5e:2x2
jax: 0.10.0
libtpu: 0.0.40
codegen_flags: <defaults>
</compile_context>

<pallas_src>
import functools
import math

import jax
import jax.numpy as jnp
from jax.experimental import pallas as pl
from jax.experimental.pallas import tpu as pltpu


def _round_up(x, m):
    return ((x + m - 1) // m) * m


def _cdiv(a, b):
    return -(-a // b)


def _vmem_capacity_bytes():
    # Generation-aware VMEM size (v5e/v6e: 128 MiB, v7x: 64 MiB per TensorCore).
    try:
        return int(pltpu.get_tpu_info().vmem_capacity_bytes)
    except Exception:
        return 64 << 20  # conservative fallback (v7x per-TC size)


def _mlp_kernel(num_hidden, action_dim, *refs):
    # refs layout:
    #   [x,
    #    w_in, b_in,
    #    (w_h0, b_h0), ..., (w_h{num_hidden-1}, b_h{num_hidden-1}),
    #    w_head, b_head,        # fused [actor | critic], width A+1 (no lane pad)
    #    prob_out, value_out]
    it = iter(refs)
    x_ref = next(it)
    w_in_ref, b_in_ref = next(it), next(it)
    hidden = [(next(it), next(it)) for _ in range(num_hidden)]
    w_head_ref, b_head_ref = next(it), next(it)
    prob_ref = next(it)
    value_ref = next(it)

    # Input layer + ReLU (MXU matmul, f32 accumulate; bias/ReLU stay f32 on VPU).
    x = x_ref[...]
    h = (
        jnp.dot(x.astype(w_in_ref.dtype), w_in_ref[...],
                preferred_element_type=jnp.float32)
        + b_in_ref[...]
    )
    h = jnp.maximum(h, 0.0)

    # Hidden layers + ReLU.
    for w_ref, b_ref in hidden:
        h = (
            jnp.dot(h.astype(w_ref.dtype), w_ref[...],
                    preferred_element_type=jnp.float32)
            + b_ref[...]
        )
        h = jnp.maximum(h, 0.0)

    # Fused actor+critic head: one (TB, H) @ (H, A+1) matmul.
    head = (
        jnp.dot(h.astype(w_head_ref.dtype), w_head_ref[...],
                preferred_element_type=jnp.float32)
        + b_head_ref[...]
    )

    # Numerically stable softmax over the actor logits (first A columns).
    logits = head[:, :action_dim]                       # zero-offset lane slice
    m = jnp.max(logits, axis=-1, keepdims=True)
    e = jnp.exp(logits - m)
    denom = jnp.sum(e, axis=-1, keepdims=True)
    # exact reciprocal: approx=True (~2^-12 rel err) would break the 1e-5 checks
    prob_ref[...] = (e * pl.reciprocal(denom, approx=False)).astype(prob_ref.dtype)

    # Critic value = column A of head; extract via masked lane-reduce (exact: one
    # nonzero term) to avoid a non-zero-offset lane slice.
    col = jax.lax.broadcasted_iota(jnp.int32, head.shape, dimension=1)
    value = jnp.sum(jnp.where(col == action_dim, head, 0.0), axis=-1, keepdims=True)
    value_ref[...] = value.astype(value_ref.dtype)


def fuse_params(params, compute_dtype=jnp.float32):
    """Prepare kernel params ONCE (at init / after each optimizer step), not per
    forward call: fuses the actor+critic heads into a single (H, A+1) matmul and
    optionally casts matmul weights to a narrower compute dtype.

    Note: bf16 operands only pay off for wide (>=256) hidden layers on the MXU
    (v5e/v6e/v7x all support bf16 operands); at 16/32-wide layers the matmuls are
    latency-bound and bf16 would not meet the 1e-5 checks, so f32 is the default.

    params: dict with keys
        'w_in', 'b_in'                    (obs, h0), (1, h0)
        'hidden': list of (w, b)          (h_i, h_{i+1}), (1, h_{i+1})
        'w_actor', 'b_actor'              (h_last, A), (1, A)
        'w_critic', 'b_critic'            (h_last, 1), (1, 1)
    Returns (flat_params_tuple, action_dim, num_hidden).
    """
    w_head = jnp.concatenate([params["w_actor"], params["w_critic"]], axis=1)
    b_head = jnp.concatenate([params["b_actor"], params["b_critic"]], axis=1)
    weights = [params["w_in"]] + [w for w, _ in params["hidden"]] + [w_head]
    biases = [params["b_in"]] + [b for _, b in params["hidden"]] + [b_head]
    if compute_dtype != jnp.float32:
        weights = [w.astype(compute_dtype) for w in weights]
    flat = []
    for w, b in zip(weights, biases):
        flat.append(w)
        flat.append(b.astype(jnp.float32))
    return tuple(flat), int(params["w_actor"].shape[1]), len(params["hidden"])


@functools.partial(jax.jit, static_argnames=("action_dim", "num_hidden", "batch_tile"))
def mlp_forward(state, flat_params, *, action_dim, num_hidden, batch_tile=1024):
    """Fused actor-critic MLP forward.  Returns (prob (B, A), value (B, 1))."""
    B, obs_dim = state.shape
    A = action_dim

    # ---- balanced batch tiling (bounded padding waste); even grid when B > 64
    #      so both v7x TensorCores get work via the "parallel" axis.
    n_tiles = max(1, _cdiv(B, batch_tile))
    if B > 64 and n_tiles % 2 == 1:
        n_tiles += 1
    TB = _round_up(_cdiv(B, n_tiles), 8)
    B_pad = n_tiles * TB
    if B_pad != B:
        state = jnp.pad(state, ((0, B_pad - B), (0, 0)))
    grid = (n_tiles,)

    # state/prob/value stream in TB-row tiles (double-buffered by the pipeliner);
    # weights use constant index_maps so they stay VMEM-resident across steps.
    state_spec = pl.BlockSpec((TB, obs_dim), lambda i: (i, 0))
    param_specs = [pl.BlockSpec(p.shape, lambda i: (0, 0)) for p in flat_params]
    out_specs = (pl.BlockSpec((TB, A), lambda i: (i, 0)),
                 pl.BlockSpec((TB, 1), lambda i: (i, 0)))
    out_shape = (jax.ShapeDtypeStruct((B_pad, A), jnp.float32),
                 jax.ShapeDtypeStruct((B_pad, 1), jnp.float32))

    # VMEM budget: every input BlockSpec is double-buffered (weights counted 2x),
    # plus double-buffered state/prob/value tiles, plus compiler slack; capped at
    # 75% of this generation's physical VMEM so scratch headroom remains.
    param_bytes = sum(int(p.size) * p.dtype.itemsize for p in flat_params)
    io_bytes = 2 * TB * (obs_dim * state.dtype.itemsize + (A + 1) * 4)
    est = 2 * param_bytes + io_bytes + (4 << 20)
    vmem_limit = int(min(max(est, 16 << 20), int(0.75 * _vmem_capacity_bytes())))

    kernel = functools.partial(_mlp_kernel, num_hidden, A)
    prob, value = pl.pallas_call(
        kernel,
        grid=grid,
        out_shape=out_shape,
        in_specs=[state_spec] + param_specs,
        out_specs=out_specs,
        compiler_params=pltpu.CompilerParams(
            dimension_semantics=("parallel",),   # 2 TCs on v7x; no-op v5e/v6e
            vmem_limit_bytes=vmem_limit,
        ),
    )(state, *flat_params)

    if B_pad != B:
        prob = prob[:B]
        value = value[:B]
    return prob, value


def init_params(key, obs_dim, layer_size, action_space):
    """Deterministic PyTorch-style (uniform +/- 1/sqrt(fan_in)) init.
    Weights stored as (in, out).
    (Model-level note: padding hidden widths to 128 would make activations
    lane-dense; free on the mostly-idle MXU at these sizes.)"""
    params = {"hidden": []}

    def linear(key, fan_in, fan_out):
        kw, kb = jax.random.split(key)
        bound = 1.0 / math.sqrt(fan_in)
        w = jax.random.uniform(kw, (fan_in, fan_out), jnp.float32, -bound, bound)
        b = jax.random.uniform(kb, (1, fan_out), jnp.float32, -bound, bound)
        return w, b

    keys = jax.random.split(key, len(layer_size) + 3)
    params["w_in"], params["b_in"] = linear(keys[0], obs_dim, layer_size[0])
    for i in range(len(layer_size) - 1):
        params["hidden"].append(linear(keys[1 + i], layer_size[i], layer_size[i + 1]))
    params["w_actor"], params["b_actor"] = linear(keys[-2], layer_size[-1], action_space)
    params["w_critic"], params["b_critic"] = linear(keys[-1], layer_size[-1], 1)
    return params


def reference_forward(state, params):
    # pure-JAX reference for correctness check
    h = jnp.maximum(state @ params["w_in"] + params["b_in"], 0.0)
    for w, b in params["hidden"]:
        h = jnp.maximum(h @ w + b, 0.0)
    logits = h @ params["w_actor"] + params["b_actor"]
    prob = jax.nn.softmax(logits, axis=-1)
    value = h @ params["w_critic"] + params["b_critic"]
    return prob, value


if __name__ == "__main__":
    # params: num_layers=2, layer_size=[32, 32]; obs_space=(16,); action_space=8
    batch = 2
    obs_dim = 16
    layer_size = [32, 32]
    action_space = 8

    key = jax.random.PRNGKey(0)
    k_state, k_params, k_big = jax.random.split(key, 3)
    state = jax.random.normal(k_state, (batch, obs_dim), jnp.float32)
    params = init_params(k_params, obs_dim, layer_size, action_space)

    # Head fusion / weight flattening done ONCE here, not per forward call.
    flat_params, A, num_hidden = fuse_params(params)

    prob, value = mlp_forward(state, flat_params, action_dim=A, num_hidden=num_hidden)
    prob = jax.block_until_ready(prob)
    value = jax.block_until_ready(value)

    # sanity check against pure-JAX reference
    prob_ref, value_ref = reference_forward(state, params)
    assert prob.shape == (batch, action_space)
    assert value.shape == (batch, 1)
    assert jnp.allclose(prob, prob_ref, atol=1e-5, rtol=1e-5)
    assert jnp.allclose(value, value_ref, atol=1e-5, rtol=1e-5)
    assert jnp.allclose(jnp.sum(prob, axis=-1), 1.0, atol=1e-5)

    # exercise the multi-step grid (balanced tiles + row-padding path)
    big_state = jax.random.normal(k_big, (300, obs_dim), jnp.float32)
    prob_b, value_b = mlp_forward(big_state, flat_params,
                                  action_dim=A, num_hidden=num_hidden)
    prob_b = jax.block_until_ready(prob_b)
    value_b = jax.block_until_ready(value_b)
    prob_rb, value_rb = reference_forward(big_state, params)
    assert prob_b.shape == (300, action_space)
    assert value_b.shape == (300, 1)
    assert jnp.allclose(prob_b, prob_rb, atol=1e-5, rtol=1e-5)
    assert jnp.allclose(value_b, value_rb, atol=1e-5, rtol=1e-5)

    # TODO(synk): MLPNetwork.act() (Categorical sampling / log_prob / entropy) is
    # host-side RL glue, not part of the forward kernel.
    print("KERNEL_OK")
</pallas_src>

<mosaic_0001>
module attributes {stable_mosaic.version = 11 : i64} {
  func.func @_mlp_kernel(%arg0: i32, %arg1: memref<8x16xf32, #tpu.memory_space<vmem>>, %arg2: memref<16x32xf32, #tpu.memory_space<vmem>>, %arg3: memref<1x32xf32, #tpu.memory_space<vmem>>, %arg4: memref<32x32xf32, #tpu.memory_space<vmem>>, %arg5: memref<1x32xf32, #tpu.memory_space<vmem>>, %arg6: memref<32x9xf32, #tpu.memory_space<vmem>>, %arg7: memref<1x9xf32, #tpu.memory_space<vmem>>, %arg8: memref<8x8xf32, #tpu.memory_space<vmem>>, %arg9: memref<8x1xf32, #tpu.memory_space<vmem>>) attributes {dimension_semantics = [#tpu.dimension_semantics<parallel>], iteration_bounds = array<i64: 1>, scalar_prefetch = 0 : i64, scratch_operands = 0 : i64, tpu.core_type = #tpu.core_type<tc>, window_params = [{transform_indices = @transform_0, window_bounds = array<i64: 8, 16>}, {pipeline_mode = #tpu.pipeline_mode<synchronous>, transform_indices = @transform_1, window_bounds = array<i64: 16, 32>}, {pipeline_mode = #tpu.pipeline_mode<synchronous>, transform_indices = @transform_2, window_bounds = array<i64: 1, 32>}, {pipeline_mode = #tpu.pipeline_mode<synchronous>, transform_indices = @transform_3, window_bounds = array<i64: 32, 32>}, {pipeline_mode = #tpu.pipeline_mode<synchronous>, transform_indices = @transform_4, window_bounds = array<i64: 1, 32>}, {pipeline_mode = #tpu.pipeline_mode<synchronous>, transform_indices = @transform_5, window_bounds = array<i64: 32, 9>}, {pipeline_mode = #tpu.pipeline_mode<synchronous>, transform_indices = @transform_6, window_bounds = array<i64: 1, 9>}, {transform_indices = @transform_7, window_bounds = array<i64: 8, 8>}, {transform_indices = @transform_8, window_bounds = array<i64: 8, 1>}]} {
    %c0 = arith.constant 0 : index
    %c0_0 = arith.constant 0 : index
    %0 = vector.load %arg1[%c0, %c0_0] : memref<8x16xf32, #tpu.memory_space<vmem>>, vector<8x16xf32>
    %c0_1 = arith.constant 0 : index
    %c0_2 = arith.constant 0 : index
    %1 = vector.load %arg2[%c0_1, %c0_2] : memref<16x32xf32, #tpu.memory_space<vmem>>, vector<16x32xf32>
    %cst = arith.constant dense<0.000000e+00> : vector<8x32xf32>
    %2 = tpu.matmul %0, %1, %cst {dimension_numbers = #tpu.dot_dimension_numbers<[1], [0], [0], [1], [0, 0, 1, 1], [], []>} : vector<8x16xf32>, vector<16x32xf32>, vector<8x32xf32> -> vector<8x32xf32>
    %c0_3 = arith.constant 0 : index
    %c0_4 = arith.constant 0 : index
    %3 = vector.load %arg3[%c0_3, %c0_4] : memref<1x32xf32, #tpu.memory_space<vmem>>, vector<1x32xf32>
    %4 = vector.broadcast %3 : vector<1x32xf32> to vector<8x32xf32>
    %5 = arith.addf %2, %4 : vector<8x32xf32>
    %cst_5 = arith.constant 0.000000e+00 : f32
    %6 = vector.broadcast %cst_5 : f32 to vector<8x32xf32>
    %7 = arith.maximumf %5, %6 : vector<8x32xf32>
    %c0_6 = arith.constant 0 : index
    %c0_7 = arith.constant 0 : index
    %8 = vector.load %arg4[%c0_6, %c0_7] : memref<32x32xf32, #tpu.memory_space<vmem>>, vector<32x32xf32>
    %cst_8 = arith.constant dense<0.000000e+00> : vector<8x32xf32>
    %9 = tpu.matmul %7, %8, %cst_8 {dimension_numbers = #tpu.dot_dimension_numbers<[1], [0], [0], [1], [0, 0, 1, 1], [], []>} : vector<8x32xf32>, vector<32x32xf32>, vector<8x32xf32> -> vector<8x32xf32>
    %c0_9 = arith.constant 0 : index
    %c0_10 = arith.constant 0 : index
    %10 = vector.load %arg5[%c0_9, %c0_10] : memref<1x32xf32, #tpu.memory_space<vmem>>, vector<1x32xf32>
    %11 = vector.broadcast %10 : vector<1x32xf32> to vector<8x32xf32>
    %12 = arith.addf %9, %11 : vector<8x32xf32>
    %cst_11 = arith.constant 0.000000e+00 : f32
    %13 = vector.broadcast %cst_11 : f32 to vector<8x32xf32>
    %14 = arith.maximumf %12, %13 : vector<8x32xf32>
    %c0_12 = arith.constant 0 : index
    %c0_13 = arith.constant 0 : index
    %15 = vector.load %arg6[%c0_12, %c0_13] : memref<32x9xf32, #tpu.memory_space<vmem>>, vector<32x9xf32>
    %cst_14 = arith.constant dense<0.000000e+00> : vector<8x9xf32>
    %16 = tpu.matmul %14, %15, %cst_14 {dimension_numbers = #tpu.dot_dimension_numbers<[1], [0], [0], [1], [0, 0, 1, 1], [], []>} : vector<8x32xf32>, vector<32x9xf32>, vector<8x9xf32> -> vector<8x9xf32>
    %c0_15 = arith.constant 0 : index
    %c0_16 = arith.constant 0 : index
    %17 = vector.load %arg7[%c0_15, %c0_16] : memref<1x9xf32, #tpu.memory_space<vmem>>, vector<1x9xf32>
    %18 = vector.broadcast %17 : vector<1x9xf32> to vector<8x9xf32>
    %19 = arith.addf %16, %18 : vector<8x9xf32>
    %20 = vector.extract_strided_slice %19 {offsets = [0, 0], sizes = [8, 8], strides = [1, 1]} : vector<8x9xf32> to vector<8x8xf32>
    %cst_17 = arith.constant dense<0xFF800000> : vector<8xf32>
    %21 = vector.multi_reduction <maximumf>, %20, %cst_17 [1] : vector<8x8xf32> to vector<8xf32>
    %22 = vector.shape_cast %21 : vector<8xf32> to vector<8x1xf32>
    %23 = vector.broadcast %22 : vector<8x1xf32> to vector<8x8xf32>
    %24 = arith.subf %20, %23 : vector<8x8xf32>
    %25 = math.exp %24 : vector<8x8xf32>
    %cst_18 = arith.constant dense<0.000000e+00> : vector<8xf32>
    %26 = vector.multi_reduction <add>, %25, %cst_18 [1] : vector<8x8xf32> to vector<8xf32>
    %27 = vector.shape_cast %26 : vector<8xf32> to vector<8x1xf32>
    %28 = tpu.reciprocal %27 : vector<8x1xf32> -> vector<8x1xf32>
    %29 = vector.broadcast %28 : vector<8x1xf32> to vector<8x8xf32>
    %30 = arith.mulf %25, %29 : vector<8x8xf32>
    %c0_19 = arith.constant 0 : index
    %c0_20 = arith.constant 0 : index
    %31 = vector.load %arg8[%c0_19, %c0_20] : memref<8x8xf32, #tpu.memory_space<vmem>>, vector<8x8xf32>
    tpu.vector_store %arg8[%c0_19, %c0_20], %30 {strides = array<i32>} : memref<8x8xf32, #tpu.memory_space<vmem>>, vector<8x8xf32>,
    %32 = tpu.iota {dimensions = array<i32: 1>} : vector<8x9xi32>
    %c8_i32 = arith.constant 8 : i32
    %33 = vector.broadcast %c8_i32 : i32 to vector<8x9xi32>
    %34 = arith.cmpi eq, %32, %33 : vector<8x9xi32>
    %cst_21 = arith.constant 0.000000e+00 : f32
    %35 = vector.broadcast %cst_21 : f32 to vector<8x9xf32>
    %36 = arith.select %34, %19, %35 : vector<8x9xi1>, vector<8x9xf32>
    %cst_22 = arith.constant dense<0.000000e+00> : vector<8xf32>
    %37 = vector.multi_reduction <add>, %36, %cst_22 [1] : vector<8x9xf32> to vector<8xf32>
    %38 = vector.shape_cast %37 : vector<8xf32> to vector<8x1xf32>
    %c0_23 = arith.constant 0 : index
    %c0_24 = arith.constant 0 : index
    %39 = vector.load %arg9[%c0_23, %c0_24] : memref<8x1xf32, #tpu.memory_space<vmem>>, vector<8x1xf32>
    tpu.vector_store %arg9[%c0_23, %c0_24], %38 {strides = array<i32>} : memref<8x1xf32, #tpu.memory_space<vmem>>, vector<8x1xf32>,
    return
  }
  func.func @transform_0(%arg0: i32) -> (i32, i32) {
    %c0_i32 = arith.constant 0 : i32
    %c0_i32_0 = arith.constant 0 : i32
    return %arg0, %c0_i32 : i32, i32
  }
  func.func @transform_1(%arg0: i32) -> (i32, i32) {
    %c0_i32 = arith.constant 0 : i32
    %c0_i32_0 = arith.constant 0 : i32
    %c0_i32_1 = arith.constant 0 : i32
    return %c0_i32, %c0_i32_0 : i32, i32
  }
  func.func @transform_2(%arg0: i32) -> (i32, i32) {
    %c0_i32 = arith.constant 0 : i32
    %c0_i32_0 = arith.constant 0 : i32
    %c0_i32_1 = arith.constant 0 : i32
    return %c0_i32, %c0_i32_0 : i32, i32
  }
  func.func @transform_3(%arg0: i32) -> (i32, i32) {
    %c0_i32 = arith.constant 0 : i32
    %c0_i32_0 = arith.constant 0 : i32
    %c0_i32_1 = arith.constant 0 : i32
    return %c0_i32, %c0_i32_0 : i32, i32
  }
  func.func @transform_4(%arg0: i32) -> (i32, i32) {
    %c0_i32 = arith.constant 0 : i32
    %c0_i32_0 = arith.constant 0 : i32
    %c0_i32_1 = arith.constant 0 : i32
    return %c0_i32, %c0_i32_0 : i32, i32
  }
  func.func @transform_5(%arg0: i32) -> (i32, i32) {
    %c0_i32 = arith.constant 0 : i32
    %c0_i32_0 = arith.constant 0 : i32
    %c0_i32_1 = arith.constant 0 : i32
    return %c0_i32, %c0_i32_0 : i32, i32
  }
  func.func @transform_6(%arg0: i32) -> (i32, i32) {
    %c0_i32 = arith.constant 0 : i32
    %c0_i32_0 = arith.constant 0 : i32
    %c0_i32_1 = arith.constant 0 : i32
    return %c0_i32, %c0_i32_0 : i32, i32
  }
  func.func @transform_7(%arg0: i32) -> (i32, i32) {
    %c0_i32 = arith.constant 0 : i32
    %c0_i32_0 = arith.constant 0 : i32
    return %arg0, %c0_i32 : i32, i32
  }
  func.func @transform_8(%arg0: i32) -> (i32, i32) {
    %c0_i32 = arith.constant 0 : i32
    %c0_i32_0 = arith.constant 0 : i32
    return %arg0, %c0_i32 : i32, i32
  }
}

</mosaic_0001>

<bundles_post_ra>
// kernel: mlp_forward.1
= control target key start
LH: loop header
LB: loop body
LE: loop exit
PB: predicated region body
PF: predicated region fallthrough
CT: control target
= control target key end

     0   :  { %vm35_vm0 = vcmask 130048   ;;  %vm68_vm1 = vcmask 261120   ;;  %v150_v19 = vlaneseq  ;;  %vm124_vm2 = vcmask 64512   ;;  %s274_s1 = inlined_call_operand.vmem [shape: f32[16,32], index: 1, kind: input, shape index: {}]   ;;  %s275_s0 = inlined_call_operand.vmem [shape: f32[8,16], index: 0, kind: input, shape index: {}]   ;;  %s276_s3 = inlined_call_operand.vmem [shape: f32[32,32], index: 3, kind: input, shape index: {}]   ;;  %s277_s2 = inlined_call_operand.vmem [shape: f32[1,32], index: 2, kind: input, shape index: {}]   ;;  %s278_s4 = inlined_call_operand.vmem [shape: f32[1,32], index: 4, kind: input, shape index: {}]   ;;  %s279_s5 = inlined_call_operand.vmem [shape: f32[32,9], index: 5, kind: input, shape index: {}]   ;;  %s280_s6 = inlined_call_operand.vmem [shape: f32[1,9], index: 6, kind: input, shape index: {}]   ;;  %s281_s8 = inlined_call_operand.vmem [shape: f32[8,1], index: 8, kind: output, shape index: {1}]   ;;  %s282_s7 = inlined_call_operand.vmem [shape: f32[8,8], index: 7, kind: output, shape index: {0}]  }
   0x1   :  { %v30_v0 = vld [vmem:[%s274_s1 + $0x8] sm:$0xff]  ;;  %v29_v1 = vld [vmem:[%s274_s1] sm:$0xff]  ;;  %v63_v3 = vld [vmem:[%s276_s3 + $0x18] sm:$0xff]  ;;  %vm154_vm4 = vcmask 72704   ;;  %vm158_vm5 = vcmask 7168  }
   0x2   :  { %53 = vmatpush.msra.mxu0 %v30_v0  ;;  %v28_v2 = vld [vmem:[%s275_s0] sm:$0xff]  ;;  %84 = vmatpush.msra.mxu1 %v63_v3  ;;  %v62_v4 = vld [vmem:[%s276_s3 + $0x10] sm:$0xff]  ;;  %v61_v5 = vld [vmem:[%s276_s3 + $0x8] sm:$0xff]  ;;  %v151_v20 = vand.u32 127, %v150_v19 }
   0x3   :  { %v60_v6 = vld [vmem:[%s276_s3] sm:$0xff]  ;;  %v96_v7 = vld [vmem:[%s279_s5 + $0x18] sm:$0xff]  ;;  %v95_v12 = vld [vmem:[%s279_s5 + $0x10] sm:$0xff] }
   0x4   :  { %54 = vmatpush.msra.mxu0 %v29_v1  ;;  %85 = vmatpush.msra.mxu1 %v62_v4  ;;  %v171_v8 = vld [vmem:[%s277_s2] ss:$0 sm:$0xff]  ;;  %v94_v13 = vld [vmem:[%s279_s5 + $0x8] sm:$0xff]  ;;  %vm152_vm3 = vcmp.eq.s32.totalorder %v151_v20, 8 }
   0x5   :  { %168 = vmatmul.msk.f32.vlgmr.msra.gmra.mxu0 %vm35_vm0, %v28_v2  ;;  %116 = vmatpush.msra.mxu2 %v96_v7  ;;  %v93_v14 = vld [vmem:[%s279_s5] sm:$0xff] }
   0x6   :  { %86 = vmatpush.msra.mxu1 %v61_v5  ;;  %v172_v15 = vld [vmem:[%s278_s4] ss:$0 sm:$0xff] }
   0x7   :  { %117 = vmatpush.msra.mxu2 %v95_v12  ;;  %v173_v21 = vld [vmem:[%s280_s6] ss:$0 sm:$0xff] }
   0x8   :  { %87 = vmatpush.msra.mxu1 %v60_v6 }
   0x9   :  { %118 = vmatpush.msra.mxu2 %v94_v13 }
   0xb   :  { %119 = vmatpush.msra.mxu2 %v93_v14 }
  0x82   :  { %v56_v9 = vpop.f32.mrf.mxu0 }
  0x83   :  { %v57_v10 = vadd.f32 %v171_v8, %v56_v9 }
  0x85   :  { %v59_v11 = vmax.f32 %v57_v10, 0.0 }
  0x87   :  { %169 = vmatmul.msk.f32.vlgmr.msra.gmra.mxu1 %vm68_vm1, %v59_v11 }
 0x104   :  { %v89_v16 = vpop.f32.mrf.mxu1 }
 0x105   :  { %v90_v17 = vadd.f32 %v172_v15, %v89_v16 }
 0x107   :  { %v92_v18 = vmax.f32 %v90_v17, 0.0 }
 0x109   :  { %170 = vmatmul.msk.f32.vlgmr.msra.gmra.mxu2 %vm68_vm1, %v92_v18 }
 0x18c   :  { %v121_v22 = vpop.f32.mrf.mxu2 }
 0x18d   :  { %v122_v23 = vadd.f32 %v173_v21, %v121_v22 }
 0x18f   :  { %v125_v24 = vsel %vm124_vm2, %v122_v23, -inf  ;;  %v153_v25 = vsel %vm152_vm3, %v122_v23, 0.0 }
 0x190   :  { %126 = vmax.xlane.f32.xlu0 %v125_v24  ;;  %v155_v26 = vsel %vm154_vm4, %v153_v25, 0.0 }
 0x191   :  { %156 = vadd.xlane.f32.xlu1 %v155_v26 }
 0x203   :  { %v127_v27 = vpop.xlane.xlu0 %126 }
 0x204   :  { %v128_v28 = vsub.f32 %v122_v23, %v127_v27  ;;  %v157_v29 = vpop.xlane.xlu1 %156 }
 0x205   :  { %159 = vst.msk [vmem:[%s281_s8] sm:$0xff] %vm158_vm5, %v157_v29 }
 0x206   :  { %v129_v30 = vmul.f32 1.442695, %v128_v28 }
 0x208   :  { %174 = vpow2.f32 %v129_v30 }
 0x20e   :  { %v175_v31 = vpop.eup %174 }
 0x20f   :  { %v131_v32 = vsel %vm124_vm2, %v175_v31, 0.0 }
 0x210   :  { %132 = vadd.xlane.f32.xlu0 %v131_v32 }
 0x283   :  { %v133_v33 = vpop.xlane.xlu0 %132 }
 0x284   :  { %176 = vrcp.f32 %v133_v33  ;;  %v145_v37 = vand.u32 2147483648, %v133_v33  ;;  %v143_v39 = vand.u32 2147483647, %v133_v33  ;;  %vm139_vm7 = vweird.f32 %v133_v33 }
 0x286   :  { %v146_v41 = vor.u32 1.1754944e-38, %v145_v37  ;;  %vm144_vm9 = vcmp.eq.f32.partialorder %v143_v39, 8.507059e+37 }
 0x28a   :  { %v177_v34 = vpop.eup %176 }
 0x28b   :  { %v135_v35 = vmul.f32 %v177_v34, %v133_v33  ;;  %vm140_vm6 = vweird.f32 %v177_v34 }
 0x28c   :  { %vm141_vm8 = vmor %vm139_vm7, %vm140_vm6 }
 0x28d   :  { %v136_v36 = vsub.f32 1.0, %v135_v35 }
 0x28f   :  { %v137_v38 = vmul.f32 %v177_v34, %v136_v36 }
 0x291   :  { %v138_v40 = vadd.f32 %v177_v34, %v137_v38 }
 0x293   :  { %v142_v42 = vsel %vm141_vm8, %v177_v34, %v138_v40 }
 0x294   :  { %v147_v43 = vsel %vm144_vm9, %v146_v41, %v142_v42 }
 0x295   :  { %v148_v44 = vmul.f32 %v175_v31, %v147_v43 }
 0x297   :  { %149 = vst.msk [vmem:[%s282_s7] sm:$0xff] %vm124_vm2, %v148_v44 }

</bundles_post_ra>
